<compile_context>
chip_gen: v6e
topology: v6e:2x2x1
jax: 0.10.0
libtpu: 0.0.40
codegen_flags: <defaults>
</compile_context>

<pallas_src>
import functools

import jax
import jax.numpy as jnp
from jax.experimental import pallas as pl
from jax.experimental.pallas import tpu as pltpu

EPS = 1e-5                    # PyTorch BatchNorm1d default
LANE = 128                    # TPU lane width: pad all feature dims to a multiple of this
MATMUL_DTYPE = jnp.bfloat16   # MXU operand dtype (f32 accumulation); jnp.float32 for exact parity


# ---------------------------------------------------------------------------
# Kernel: the whole network in one invocation (grid-less, everything in VMEM).
# ---------------------------------------------------------------------------
def _snake_kernel(x_ref, w_ref, gb_ref, o_ref, *, n_layers):
    # x_ref : (B, P)       f32        lane-dense padded input
    # w_ref : (L, P, P)    bf16/f32   pre-transposed, zero-padded weights
    # gb_ref: (L, 2, 1, P) f32        [gamma; beta], zero-padded
    h = x_ref[...]                                             # (B, P) f32
    for i in range(n_layers):                                  # static unroll (small L)
        w = w_ref[i]                                           # (P, P)
        # Linear (bias omitted: training-mode BN centering cancels it exactly);
        # bf16 operands, f32 accumulation on the MXU.
        z = jnp.dot(h.astype(w.dtype), w,
                    preferred_element_type=jnp.float32)        # (B, P) f32
        # BatchNorm1d, training mode: biased batch statistics over axis 0.
        mean = jnp.mean(z, axis=0, keepdims=True)              # (1, P)  XLU sublane reduce
        ctr = z - mean
        var = jnp.mean(ctr * ctr, axis=0, keepdims=True)       # (1, P)
        scale = gb_ref[i, 0] * jax.lax.rsqrt(var + EPS)        # (1, P)  gamma folded in, EUP rsqrt
        h = ctr * scale + gb_ref[i, 1]                         # (B, P)
        if i < n_layers - 1:
            h = jnp.maximum(h, 0.0)                            # ReLU (not on last layer)
    o_ref[...] = h.astype(o_ref.dtype)                         # (B, P) lane-dense full-width store


# ---------------------------------------------------------------------------
# Parameter construction / packing (done once, outside the forward path).
# ---------------------------------------------------------------------------
def init_params(layer_sizes, key):
    """Deterministic init mirroring PyTorch shapes:
    Linear: weight (out, in) ~ U(-1/sqrt(in), 1/sqrt(in)), bias same.
    BatchNorm1d: gamma = 1, beta = 0.
    Weights are returned transposed (in, out) so the kernel computes x @ W."""
    params = []
    for i in range(len(layer_sizes) - 1):
        cin, cout = layer_sizes[i], layer_sizes[i + 1]
        key, kw, kb = jax.random.split(key, 3)
        bound = 1.0 / (cin ** 0.5)
        w = jax.random.uniform(kw, (cout, cin), jnp.float32, -bound, bound)
        b = jax.random.uniform(kb, (cout,), jnp.float32, -bound, bound)
        gamma = jnp.ones((cout,), jnp.float32)
        beta = jnp.zeros((cout,), jnp.float32)
        params.append((w.T, b, gamma, beta))
    return params


def pack_params(params, lane=LANE):
    """Zero-pad every layer to a common lane-dense width P (multiple of 128) and
    stack into an (L, P, P) weight tensor + an (L, 2, 1, P) gamma/beta tensor.
    The Linear bias is intentionally NOT packed (cancelled by BN centering).
    Weights are cast to MATMUL_DTYPE.  Hoisted out of the per-forward path."""
    dims = [params[0][0].shape[0]] + [p[0].shape[1] for p in params]
    P = max(int(pl.cdiv(d, lane)) * lane for d in dims)
    ws, gbs = [], []
    for wt, _b, gamma, beta in params:
        cin, cout = wt.shape
        ws.append(jnp.pad(wt, ((0, P - cin), (0, P - cout))))
        g = jnp.pad(gamma, (0, P - cout))
        bt = jnp.pad(beta, (0, P - cout))
        gbs.append(jnp.stack([g, bt])[:, None, :])             # (2, 1, P)
    return (jnp.stack(ws).astype(MATMUL_DTYPE),                # (L, P, P)
            jnp.stack(gbs).astype(jnp.float32))                # (L, 2, 1, P)


# ---------------------------------------------------------------------------
# Forward: one jitted function -> one fused pallas_call per forward.
# ---------------------------------------------------------------------------
@functools.partial(jax.jit, static_argnames=("n_out",))
def snake_net_forward(x, packed, *, n_out):
    w_s, gb_s = packed
    B, cin = x.shape
    L, P, _ = w_s.shape
    x_p = jnp.pad(x.astype(jnp.float32), ((0, 0), (0, P - cin)))   # lane-dense input

    vmem = pl.BlockSpec(memory_space=pltpu.MemorySpace.VMEM)
    bytes_accessed = (x_p.size * 4 + w_s.size * w_s.dtype.itemsize
                      + gb_s.size * 4 + B * P * 4)
    out_p = pl.pallas_call(
        functools.partial(_snake_kernel, n_layers=L),
        out_shape=jax.ShapeDtypeStruct((B, P), jnp.float32),
        in_specs=[vmem, vmem, vmem],
        out_specs=vmem,
        compiler_params=pltpu.CompilerParams(
            vmem_limit_bytes=32 * 1024 * 1024),        # explicit headroom (v7x-safe)
        cost_estimate=pl.CostEstimate(
            flops=2 * B * P * P * L,
            transcendentals=L * P,
            bytes_accessed=bytes_accessed),
    )(x_p, w_s, gb_s)
    return out_p[:, :n_out]                            # drop padded output lanes


# ---------------------------------------------------------------------------
# Pure-JAX reference (PyTorch training-mode BN forward, WITH the Linear bias),
# selectable matmul dtype.
# ---------------------------------------------------------------------------
def snake_net_reference(x, params, matmul_dtype=jnp.float32):
    n = len(params)
    h = x.astype(jnp.float32)
    for i, (wt, b, gamma, beta) in enumerate(params):
        z = jnp.dot(h.astype(matmul_dtype), wt.astype(matmul_dtype),
                    preferred_element_type=jnp.float32) + b
        mean = jnp.mean(z, axis=0, keepdims=True)
        var = jnp.mean((z - mean) ** 2, axis=0, keepdims=True)
        y = gamma * (z - mean) * jax.lax.rsqrt(var + EPS) + beta
        if i < n - 1:
            y = jnp.maximum(y, 0.0)
        h = y
    return h


if __name__ == "__main__":
    layer_sizes = [32, 64, 64, 4]   # SnakeNet(layer_sizes)
    batch = 8

    key = jax.random.PRNGKey(0)
    key, kx = jax.random.split(key)
    x = jax.random.normal(kx, (batch, layer_sizes[0]), jnp.float32)

    params = init_params(layer_sizes, key)
    packed = pack_params(params)

    out = snake_net_forward(x, packed, n_out=layer_sizes[-1])
    out = jax.block_until_ready(out)
    assert out.shape == (batch, layer_sizes[-1])

    # Structural correctness: compare against a reference using the SAME matmul
    # precision (bf16 operands, f32 accumulation).  The reference includes the
    # Linear bias; the kernel drops it (exactly cancelled by BN centering), so
    # a tight tolerance still holds.
    ref_matched = snake_net_reference(x, params, matmul_dtype=MATMUL_DTYPE)
    assert jnp.allclose(out, ref_matched, atol=1e-3, rtol=1e-3), \
        "mismatch vs matched-precision reference"

    # Coarse sanity check that the bf16 operand choice stays close to the pure
    # f32 PyTorch-equivalent forward (structure already verified above).
    ref_f32 = snake_net_reference(x, params, matmul_dtype=jnp.float32)
    assert jnp.allclose(out, ref_f32, atol=2e-1, rtol=2e-1), \
        "bf16 drift vs f32 reference too large"

    print("KERNEL_OK")
</pallas_src>

<mosaic_0001>
module attributes {stable_mosaic.version = 11 : i64} {
  func.func @_snake_kernel(%arg0: memref<8x128xf32, #tpu.memory_space<vmem>>, %arg1: memref<3x128x128xbf16, #tpu.memory_space<vmem>>, %arg2: memref<3x2x1x128xf32, #tpu.memory_space<vmem>>, %arg3: memref<8x128xf32, #tpu.memory_space<vmem>>) attributes {dimension_semantics = [], scalar_prefetch = 0 : i64, scratch_operands = 0 : i64, tpu.core_type = #tpu.core_type<tc>} {
    %c0 = arith.constant 0 : index
    %c0_0 = arith.constant 0 : index
    %0 = vector.load %arg0[%c0, %c0_0] : memref<8x128xf32, #tpu.memory_space<vmem>>, vector<8x128xf32>
    %c0_1 = arith.constant 0 : index
    %c0_2 = arith.constant 0 : index
    %c0_3 = arith.constant 0 : index
    %1 = vector.load %arg1[%c0_1, %c0_2, %c0_3] : memref<3x128x128xbf16, #tpu.memory_space<vmem>>, vector<1x128x128xbf16>
    %2 = vector.shape_cast %1 : vector<1x128x128xbf16> to vector<128x128xbf16>
    %3 = arith.truncf %0 : vector<8x128xf32> to vector<8x128xbf16>
    %cst = arith.constant dense<0.000000e+00> : vector<8x128xf32>
    %4 = tpu.matmul %3, %2, %cst {dimension_numbers = #tpu.dot_dimension_numbers<[1], [0], [0], [1], [0, 0, 1, 1], [], []>} : vector<8x128xbf16>, vector<128x128xbf16>, vector<8x128xf32> -> vector<8x128xf32>
    %cst_4 = arith.constant dense<0.000000e+00> : vector<128xf32>
    %5 = vector.multi_reduction <add>, %4, %cst_4 [0] : vector<8x128xf32> to vector<128xf32>
    %6 = vector.shape_cast %5 : vector<128xf32> to vector<1x128xf32>
    %cst_5 = arith.constant 8.000000e+00 : f32
    %7 = vector.broadcast %cst_5 : f32 to vector<1x128xf32>
    %8 = arith.divf %6, %7 : vector<1x128xf32>
    %9 = vector.broadcast %8 : vector<1x128xf32> to vector<8x128xf32>
    %10 = arith.subf %4, %9 : vector<8x128xf32>
    %11 = arith.mulf %10, %10 : vector<8x128xf32>
    %cst_6 = arith.constant dense<0.000000e+00> : vector<128xf32>
    %12 = vector.multi_reduction <add>, %11, %cst_6 [0] : vector<8x128xf32> to vector<128xf32>
    %13 = vector.shape_cast %12 : vector<128xf32> to vector<1x128xf32>
    %cst_7 = arith.constant 8.000000e+00 : f32
    %14 = vector.broadcast %cst_7 : f32 to vector<1x128xf32>
    %15 = arith.divf %13, %14 : vector<1x128xf32>
    %c0_8 = arith.constant 0 : index
    %c0_9 = arith.constant 0 : index
    %c0_10 = arith.constant 0 : index
    %c0_11 = arith.constant 0 : index
    %16 = vector.load %arg2[%c0_8, %c0_9, %c0_10, %c0_11] : memref<3x2x1x128xf32, #tpu.memory_space<vmem>>, vector<1x1x1x128xf32>
    %17 = vector.shape_cast %16 : vector<1x1x1x128xf32> to vector<1x128xf32>
    %cst_12 = arith.constant 9.99999974E-6 : f32
    %18 = vector.broadcast %cst_12 : f32 to vector<1x128xf32>
    %19 = arith.addf %15, %18 : vector<1x128xf32>
    %20 = math.rsqrt %19 : vector<1x128xf32>
    %21 = arith.mulf %17, %20 : vector<1x128xf32>
    %22 = vector.broadcast %21 : vector<1x128xf32> to vector<8x128xf32>
    %23 = arith.mulf %10, %22 : vector<8x128xf32>
    %c0_13 = arith.constant 0 : index
    %c1 = arith.constant 1 : index
    %c0_14 = arith.constant 0 : index
    %c0_15 = arith.constant 0 : index
    %24 = vector.load %arg2[%c0_13, %c1, %c0_14, %c0_15] : memref<3x2x1x128xf32, #tpu.memory_space<vmem>>, vector<1x1x1x128xf32>
    %25 = vector.shape_cast %24 : vector<1x1x1x128xf32> to vector<1x128xf32>
    %26 = vector.broadcast %25 : vector<1x128xf32> to vector<8x128xf32>
    %27 = arith.addf %23, %26 : vector<8x128xf32>
    %cst_16 = arith.constant 0.000000e+00 : f32
    %28 = vector.broadcast %cst_16 : f32 to vector<8x128xf32>
    %29 = arith.maximumf %27, %28 : vector<8x128xf32>
    %c1_17 = arith.constant 1 : index
    %c0_18 = arith.constant 0 : index
    %c0_19 = arith.constant 0 : index
    %30 = vector.load %arg1[%c1_17, %c0_18, %c0_19] : memref<3x128x128xbf16, #tpu.memory_space<vmem>>, vector<1x128x128xbf16>
    %31 = vector.shape_cast %30 : vector<1x128x128xbf16> to vector<128x128xbf16>
    %32 = arith.truncf %29 : vector<8x128xf32> to vector<8x128xbf16>
    %cst_20 = arith.constant dense<0.000000e+00> : vector<8x128xf32>
    %33 = tpu.matmul %32, %31, %cst_20 {dimension_numbers = #tpu.dot_dimension_numbers<[1], [0], [0], [1], [0, 0, 1, 1], [], []>} : vector<8x128xbf16>, vector<128x128xbf16>, vector<8x128xf32> -> vector<8x128xf32>
    %cst_21 = arith.constant dense<0.000000e+00> : vector<128xf32>
    %34 = vector.multi_reduction <add>, %33, %cst_21 [0] : vector<8x128xf32> to vector<128xf32>
    %35 = vector.shape_cast %34 : vector<128xf32> to vector<1x128xf32>
    %cst_22 = arith.constant 8.000000e+00 : f32
    %36 = vector.broadcast %cst_22 : f32 to vector<1x128xf32>
    %37 = arith.divf %35, %36 : vector<1x128xf32>
    %38 = vector.broadcast %37 : vector<1x128xf32> to vector<8x128xf32>
    %39 = arith.subf %33, %38 : vector<8x128xf32>
    %40 = arith.mulf %39, %39 : vector<8x128xf32>
    %cst_23 = arith.constant dense<0.000000e+00> : vector<128xf32>
    %41 = vector.multi_reduction <add>, %40, %cst_23 [0] : vector<8x128xf32> to vector<128xf32>
    %42 = vector.shape_cast %41 : vector<128xf32> to vector<1x128xf32>
    %cst_24 = arith.constant 8.000000e+00 : f32
    %43 = vector.broadcast %cst_24 : f32 to vector<1x128xf32>
    %44 = arith.divf %42, %43 : vector<1x128xf32>
    %c1_25 = arith.constant 1 : index
    %c0_26 = arith.constant 0 : index
    %c0_27 = arith.constant 0 : index
    %c0_28 = arith.constant 0 : index
    %45 = vector.load %arg2[%c1_25, %c0_26, %c0_27, %c0_28] : memref<3x2x1x128xf32, #tpu.memory_space<vmem>>, vector<1x1x1x128xf32>
    %46 = vector.shape_cast %45 : vector<1x1x1x128xf32> to vector<1x128xf32>
    %cst_29 = arith.constant 9.99999974E-6 : f32
    %47 = vector.broadcast %cst_29 : f32 to vector<1x128xf32>
    %48 = arith.addf %44, %47 : vector<1x128xf32>
    %49 = math.rsqrt %48 : vector<1x128xf32>
    %50 = arith.mulf %46, %49 : vector<1x128xf32>
    %51 = vector.broadcast %50 : vector<1x128xf32> to vector<8x128xf32>
    %52 = arith.mulf %39, %51 : vector<8x128xf32>
    %c1_30 = arith.constant 1 : index
    %c1_31 = arith.constant 1 : index
    %c0_32 = arith.constant 0 : index
    %c0_33 = arith.constant 0 : index
    %53 = vector.load %arg2[%c1_30, %c1_31, %c0_32, %c0_33] : memref<3x2x1x128xf32, #tpu.memory_space<vmem>>, vector<1x1x1x128xf32>
    %54 = vector.shape_cast %53 : vector<1x1x1x128xf32> to vector<1x128xf32>
    %55 = vector.broadcast %54 : vector<1x128xf32> to vector<8x128xf32>
    %56 = arith.addf %52, %55 : vector<8x128xf32>
    %cst_34 = arith.constant 0.000000e+00 : f32
    %57 = vector.broadcast %cst_34 : f32 to vector<8x128xf32>
    %58 = arith.maximumf %56, %57 : vector<8x128xf32>
    %c2 = arith.constant 2 : index
    %c0_35 = arith.constant 0 : index
    %c0_36 = arith.constant 0 : index
    %59 = vector.load %arg1[%c2, %c0_35, %c0_36] : memref<3x128x128xbf16, #tpu.memory_space<vmem>>, vector<1x128x128xbf16>
    %60 = vector.shape_cast %59 : vector<1x128x128xbf16> to vector<128x128xbf16>
    %61 = arith.truncf %58 : vector<8x128xf32> to vector<8x128xbf16>
    %cst_37 = arith.constant dense<0.000000e+00> : vector<8x128xf32>
    %62 = tpu.matmul %61, %60, %cst_37 {dimension_numbers = #tpu.dot_dimension_numbers<[1], [0], [0], [1], [0, 0, 1, 1], [], []>} : vector<8x128xbf16>, vector<128x128xbf16>, vector<8x128xf32> -> vector<8x128xf32>
    %cst_38 = arith.constant dense<0.000000e+00> : vector<128xf32>
    %63 = vector.multi_reduction <add>, %62, %cst_38 [0] : vector<8x128xf32> to vector<128xf32>
    %64 = vector.shape_cast %63 : vector<128xf32> to vector<1x128xf32>
    %cst_39 = arith.constant 8.000000e+00 : f32
    %65 = vector.broadcast %cst_39 : f32 to vector<1x128xf32>
    %66 = arith.divf %64, %65 : vector<1x128xf32>
    %67 = vector.broadcast %66 : vector<1x128xf32> to vector<8x128xf32>
    %68 = arith.subf %62, %67 : vector<8x128xf32>
    %69 = arith.mulf %68, %68 : vector<8x128xf32>
    %cst_40 = arith.constant dense<0.000000e+00> : vector<128xf32>
    %70 = vector.multi_reduction <add>, %69, %cst_40 [0] : vector<8x128xf32> to vector<128xf32>
    %71 = vector.shape_cast %70 : vector<128xf32> to vector<1x128xf32>
    %cst_41 = arith.constant 8.000000e+00 : f32
    %72 = vector.broadcast %cst_41 : f32 to vector<1x128xf32>
    %73 = arith.divf %71, %72 : vector<1x128xf32>
    %c2_42 = arith.constant 2 : index
    %c0_43 = arith.constant 0 : index
    %c0_44 = arith.constant 0 : index
    %c0_45 = arith.constant 0 : index
    %74 = vector.load %arg2[%c2_42, %c0_43, %c0_44, %c0_45] : memref<3x2x1x128xf32, #tpu.memory_space<vmem>>, vector<1x1x1x128xf32>
    %75 = vector.shape_cast %74 : vector<1x1x1x128xf32> to vector<1x128xf32>
    %cst_46 = arith.constant 9.99999974E-6 : f32
    %76 = vector.broadcast %cst_46 : f32 to vector<1x128xf32>
    %77 = arith.addf %73, %76 : vector<1x128xf32>
    %78 = math.rsqrt %77 : vector<1x128xf32>
    %79 = arith.mulf %75, %78 : vector<1x128xf32>
    %80 = vector.broadcast %79 : vector<1x128xf32> to vector<8x128xf32>
    %81 = arith.mulf %68, %80 : vector<8x128xf32>
    %c2_47 = arith.constant 2 : index
    %c1_48 = arith.constant 1 : index
    %c0_49 = arith.constant 0 : index
    %c0_50 = arith.constant 0 : index
    %82 = vector.load %arg2[%c2_47, %c1_48, %c0_49, %c0_50] : memref<3x2x1x128xf32, #tpu.memory_space<vmem>>, vector<1x1x1x128xf32>
    %83 = vector.shape_cast %82 : vector<1x1x1x128xf32> to vector<1x128xf32>
    %84 = vector.broadcast %83 : vector<1x128xf32> to vector<8x128xf32>
    %85 = arith.addf %81, %84 : vector<8x128xf32>
    %c0_51 = arith.constant 0 : index
    %c0_52 = arith.constant 0 : index
    %86 = vector.load %arg3[%c0_51, %c0_52] : memref<8x128xf32, #tpu.memory_space<vmem>>, vector<8x128xf32>
    tpu.vector_store %arg3[%c0_51, %c0_52], %85 {strides = array<i32>} : memref<8x128xf32, #tpu.memory_space<vmem>>, vector<8x128xf32>,
    return
  }
}

</mosaic_0001>

<bundles_post_ra>
// kernel: snake_net_forward.1
= control target key start
LH: loop header
LB: loop body
LE: loop exit
PB: predicated region body
PF: predicated region fallthrough
CT: control target
= control target key end

     0   :  { %8 = vsyncpa [#allocation3], 0  ;;  %s642_s12 = smov [#allocation2]   ;;  %s729_s0 = inlined_call_operand.vmem [shape: f32[8,128], index: 0, kind: input, shape index: {}]   ;;  %s730_s1 = inlined_call_operand.hbm [shape: bf16[3,128,128], index: 1, kind: input, shape index: {}]   ;;  %s731_s2 = inlined_call_operand.vmem [shape: f32[3,2,1,128], index: 2, kind: input, shape index: {}]   ;;  %s732_s3 = inlined_call_operand.vmem [shape: f32[8,128], index: 3, kind: output, shape index: {}]  }
   0x1   :  { %s16_s13 = sshll.u32 %s642_s12, 4  ;;  %s17_s13 = int_to_ptr.vmem [resolvable:$true] %s16_s13 }
   0x2   :  { %s628_s14 = scalar_lea.vmem %s17_s13, 3072  ;;  %p633_p1 = scmp.lt.s32.totalorder %s17_s13, %s17_s13 }
   0x3   :  { %p629_p0 = scmp.ne.s32.totalorder %s17_s13, %s628_s14  ;;  %p634_p2 = scmp.lt.s32.totalorder %s628_s14, %s628_s14 }
   0x5   :  { %p635_p3 = por %p634_p2, %p633_p1 }
   0x7   :  { %p636_p4 = pnand %p635_p3, %p629_p0 }
   0x9   :  { %639 = shalt.err (!%p636_p4)
}
   0xa   :  { %s643_s15 = smov 64   ;;  %s644_s16 = smov 4  }
   0xb   :  { %22 = dma.hbm_to_vmem [thread:$0]  %s730_s1, 3072, %s17_s13, [#allocation3], %s643_s15, %s643_s15, %s644_s16  }
   0xc   :  { %640 = dma.done.wait [#allocation3], 3072  }
   0xd   :  { %641 = vsyncadd [#allocation3], 4294964224  ;;  %v645_v0 = vmov 0.0   ;;  %vm646_vm0 = vmmov 0   ;;  %v590_v1 = vld [vmem:[#allocation2 + $0x38] sm:$0xff]   ;;  %v591_v2 = vld [vmem:[#allocation2 + $0x30] sm:$0xff]   ;;  %v157_v40 = vlaneseq }
   0xe   :  { %525 = vmatprep.subr.bf16.mxu0 %v645_v0  ;;  %541 = vmatprep.mubr.msk.bf16.mxu0 %vm646_vm0, %v645_v0  ;;  %v592_v3 = vld [vmem:[#allocation2 + $0x28] sm:$0xff]   ;;  %v593_v4 = vld [vmem:[#allocation2 + $0x20] sm:$0xff]   ;;  %v594_v5 = vld [vmem:[#allocation2 + $0x18] sm:$0xff]  }
   0xf   :  { %545 = vmatprep.subr.bf16.mxu1 %v645_v0  ;;  %561 = vmatprep.mubr.msk.bf16.mxu1 %vm646_vm0, %v645_v0  ;;  %v595_v6 = vld [vmem:[#allocation2 + $0x10] sm:$0xff]   ;;  %v596_v7 = vld [vmem:[#allocation2 + $0x8] sm:$0xff]   ;;  %v597_v8 = vld [vmem:[#allocation2] sm:$0xff]   ;;  %v158_v41 = vshrl.u32 %v157_v40, 7 }
  0x10   :  { %526 = vmatpush3.bf16.msra.mxu0 %v590_v1  ;;  %v29_v9 = vld [vmem:[%s729_s0] sm:$0xff]  ;;  %v598_v11 = vld [vmem:[#allocation2 + $0x78] sm:$0xff]   ;;  %v599_v12 = vld [vmem:[#allocation2 + $0x70] sm:$0xff]  }
  0x11   :  { %527 = vmatprep.subr.bf16.mxu0 %v645_v0  ;;  %v46_v10 = vpack.c.bf16 %v29_v9, %v29_v9  ;;  %546 = vmatpush3.bf16.msra.mxu1 %v598_v11  ;;  %v600_v13 = vld [vmem:[#allocation2 + $0x68] sm:$0xff]   ;;  %v601_v14 = vld [vmem:[#allocation2 + $0x60] sm:$0xff]   ;;  %v602_v15 = vld [vmem:[#allocation2 + $0x58] sm:$0xff]   ;;  %v699_v43 = vsub.s32 0, %v158_v41 }
  0x12   :  { %547 = vmatprep.subr.bf16.mxu1 %v645_v0  ;;  %v603_v16 = vld [vmem:[#allocation2 + $0x50] sm:$0xff]   ;;  %v604_v17 = vld [vmem:[#allocation2 + $0x48] sm:$0xff]   ;;  %v605_v18 = vld [vmem:[#allocation2 + $0x40] sm:$0xff]  }
  0x13   :  { %v152_v42 = vld [vmem:[%s731_s2] sm:$0x1]  ;;  %v475_v47 = vld [vmem:[%s731_s2 + $0x1] ss:$0 sm:$0xff]  ;;  %v606_v52 = vld [vmem:[#allocation2 + $0xb8] sm:$0xff]  }
  0x14   :  { %528 = vmatpush3.bf16.msra.mxu0 %v591_v2  ;;  %v607_v53 = vld [vmem:[#allocation2 + $0xb0] sm:$0xff]   ;;  %v608_v54 = vld [vmem:[#allocation2 + $0xa8] sm:$0xff]   ;;  %v609_v55 = vld [vmem:[#allocation2 + $0xa0] sm:$0xff]  }
  0x15   :  { %529 = vmatprep.subr.bf16.mxu0 %v645_v0  ;;  %548 = vmatpush3.bf16.msra.mxu1 %v599_v12  ;;  %v610_v56 = vld [vmem:[#allocation2 + $0x98] sm:$0xff]   ;;  %v611_v57 = vld [vmem:[#allocation2 + $0x90] sm:$0xff]   ;;  %v612_v58 = vld [vmem:[#allocation2 + $0x88] sm:$0xff]  }
  0x16   :  { %549 = vmatprep.subr.bf16.mxu1 %v645_v0  ;;  %v613_v59 = vld [vmem:[#allocation2 + $0x80] sm:$0xff]  }
  0x18   :  { %530 = vmatpush3.bf16.msra.mxu0 %v592_v3 }
  0x19   :  { %531 = vmatprep.subr.bf16.mxu0 %v645_v0  ;;  %550 = vmatpush3.bf16.msra.mxu1 %v600_v13 }
  0x1a   :  { %551 = vmatprep.subr.bf16.mxu1 %v645_v0 }
  0x1c   :  { %532 = vmatpush3.bf16.msra.mxu0 %v593_v4 }
  0x1d   :  { %533 = vmatprep.subr.bf16.mxu0 %v645_v0  ;;  %552 = vmatpush3.bf16.msra.mxu1 %v601_v14 }
  0x1e   :  { %553 = vmatprep.subr.bf16.mxu1 %v645_v0 }
  0x20   :  { %534 = vmatpush3.bf16.msra.mxu0 %v594_v5 }
  0x21   :  { %535 = vmatprep.subr.bf16.mxu0 %v645_v0  ;;  %554 = vmatpush3.bf16.msra.mxu1 %v602_v15 }
  0x22   :  { %555 = vmatprep.subr.bf16.mxu1 %v645_v0 }
  0x24   :  { %536 = vmatpush3.bf16.msra.mxu0 %v595_v6 }
  0x25   :  { %537 = vmatprep.subr.bf16.mxu0 %v645_v0  ;;  %556 = vmatpush3.bf16.msra.mxu1 %v603_v16 }
  0x26   :  { %557 = vmatprep.subr.bf16.mxu1 %v645_v0 }
  0x28   :  { %538 = vmatpush3.bf16.msra.mxu0 %v596_v7 }
  0x29   :  { %539 = vmatprep.subr.bf16.mxu0 %v645_v0  ;;  %558 = vmatpush3.bf16.msra.mxu1 %v604_v17  ;;  %v484_v17 = vld [vmem:[%s731_s2 + $0x2] sm:$0x1] }
  0x2a   :  { %559 = vmatprep.subr.bf16.mxu1 %v645_v0 }
  0x2c   :  { %540 = vmatpush3.bf16.msra.mxu0 %v597_v8 }
  0x2d   :  { %565 = vmatprep.subr.bf16.mxu0 %v645_v0  ;;  %560 = vmatpush3.bf16.msra.mxu1 %v605_v18 }
  0x2f   :  { %542 = vmatmul.mubr.bf16.vlgmr.msra.gmra.mxu0 %v46_v10 }
  0x30   :  { %581 = vmatprep.mubr.msk.bf16.mxu0 %vm646_vm0, %v645_v0  ;;  %566 = vmatpush3.bf16.msra.mxu0 %v606_v52  ;;  %v497_v52 = vld [vmem:[%s731_s2 + $0x5] ss:$0 sm:$0xff] }
  0x31   :  { %567 = vmatprep.subr.bf16.mxu0 %v645_v0 }
  0x34   :  { %568 = vmatpush3.bf16.msra.mxu0 %v607_v53 }
  0x35   :  { %569 = vmatprep.subr.bf16.mxu0 %v645_v0 }
  0x38   :  { %570 = vmatpush3.bf16.msra.mxu0 %v608_v54 }
  0x39   :  { %571 = vmatprep.subr.bf16.mxu0 %v645_v0 }
  0x3c   :  { %572 = vmatpush3.bf16.msra.mxu0 %v609_v55 }
  0x3d   :  { %573 = vmatprep.subr.bf16.mxu0 %v645_v0 }
  0x40   :  { %574 = vmatpush3.bf16.msra.mxu0 %v610_v56 }
  0x41   :  { %575 = vmatprep.subr.bf16.mxu0 %v645_v0 }
  0x44   :  { %576 = vmatpush3.bf16.msra.mxu0 %v611_v57 }
  0x45   :  { %577 = vmatprep.subr.bf16.mxu0 %v645_v0 }
  0x48   :  { %578 = vmatpush3.bf16.msra.mxu0 %v612_v58 }
  0x49   :  { %579 = vmatprep.subr.bf16.mxu0 %v645_v0 }
  0x4c   :  { %580 = vmatpush3.bf16.msra.mxu0 %v613_v59 }
  0xef   :  { %v129_v19 = vpop.f32.mrf.mxu0 }
  0xf0   :  { %v135_v20 = vrot.slane %v129_v19, 4 }
  0xf1   :  { %v543_v21 = vpop.f32.mrf.mxu0 }
  0xf2   :  { %v136_v22 = vadd.f32 %v135_v20, %v129_v19  ;;  %v486_v21 = vld [vmem:[%s731_s2 + $0x3] ss:$0 sm:$0xff] }
  0xf3   :  { %v132_v23 = vpop.f32.mrf.mxu0 }
  0xf4   :  { %v137_v24 = vrot.slane %v136_v22, 2 }
  0xf5   :  { %v544_v25 = vpop.f32.mrf.mxu0 }
  0xf6   :  { %v138_v26 = vadd.f32 %v137_v24, %v136_v22 }
  0xf8   :  { %v139_v27 = vrot.slane %v138_v26, 1 }
  0xfa   :  { %v140_v28 = vadd.f32 %v139_v27, %v138_v26 }
  0xfc   :  { %v142_v29 = vmul.f32 0.125, %v140_v28 }
  0xfe   :  { %v143_v30 = vsub.f32 %v129_v19, %v142_v29 }
 0x100   :  { %v144_v31 = vmul.f32 %v143_v30, %v143_v30 }
 0x102   :  { %v145_v32 = vrot.slane %v144_v31, 4 }
 0x104   :  { %v146_v33 = vadd.f32 %v145_v32, %v144_v31 }
 0x106   :  { %v147_v34 = vrot.slane %v146_v33, 2 }
 0x108   :  { %v148_v35 = vadd.f32 %v147_v34, %v146_v33 }
 0x10a   :  { %v149_v36 = vrot.slane %v148_v35, 1 }
 0x10c   :  { %v150_v37 = vadd.f32 %v149_v36, %v148_v35 }
 0x10e   :  { %v151_v38 = vmul.f32 0.125, %v150_v37 }
 0x110   :  { %v153_v39 = vadd.f32 1e-05, %v151_v38 }
 0x112   :  { %614 = vrsqrt.f32 %v153_v39 }
 0x11f   :  { %v615_v44 = vpop.eup %614 }
 0x120   :  { %v155_v45 = vmul.f32 %v615_v44, %v152_v42 }
 0x122   :  { %v160_v46 = vrot.slane %v155_v45, %v699_v43 }
 0x124   :  { %v162_v48 = vmul.f32 %v160_v46, %v143_v30 }
 0x126   :  { %v171_v49 = vadd.f32 %v475_v47, %v162_v48  ;;  %v495_v48 = vld [vmem:[%s731_s2 + $0x4] sm:$0x1] }
 0x128   :  { %v172_v50 = vmax.f32 %v171_v49, 0.0 }
 0x12a   :  { %v190_v51 = vpack.c.bf16 %v172_v50, %v172_v50 }
 0x12c   :  { %562 = vmatmul.mubr.bf16.vlgmr.msra.gmra.mxu1 %v190_v51 }
 0x1ec   :  { %v273_v60 = vpop.f32.mrf.mxu1 }
 0x1ed   :  { %v279_v61 = vrot.slane %v273_v60, 4 }
 0x1ee   :  { %v563_v62 = vpop.f32.mrf.mxu1 }
 0x1ef   :  { %v280_v63 = vadd.f32 %v279_v61, %v273_v60 }
 0x1f0   :  { %v276_v1 = vpop.f32.mrf.mxu1 }
 0x1f1   :  { %v281_v2 = vrot.slane %v280_v63, 2 }
 0x1f2   :  { %v564_v3 = vpop.f32.mrf.mxu1 }
 0x1f3   :  { %v282_v4 = vadd.f32 %v281_v2, %v280_v63 }
 0x1f5   :  { %v283_v5 = vrot.slane %v282_v4, 1 }
 0x1f7   :  { %v284_v6 = vadd.f32 %v283_v5, %v282_v4 }
 0x1f9   :  { %v285_v7 = vmul.f32 0.125, %v284_v6 }
 0x1fb   :  { %v286_v8 = vsub.f32 %v273_v60, %v285_v7 }
 0x1fd   :  { %v287_v9 = vmul.f32 %v286_v8, %v286_v8 }
 0x1ff   :  { %v288_v10 = vrot.slane %v287_v9, 4 }
 0x201   :  { %v289_v11 = vadd.f32 %v288_v10, %v287_v9 }
 0x203   :  { %v290_v12 = vrot.slane %v289_v11, 2 }
 0x205   :  { %v291_v13 = vadd.f32 %v290_v12, %v289_v11 }
 0x207   :  { %v292_v0 = vrot.slane %v291_v13, 1 }
 0x209   :  { %v293_v14 = vadd.f32 %v292_v0, %v291_v13 }
 0x20b   :  { %v294_v15 = vmul.f32 0.125, %v293_v14 }
 0x20d   :  { %v297_v16 = vadd.f32 1e-05, %v294_v15 }
 0x20f   :  { %616 = vrsqrt.f32 %v297_v16 }
 0x21c   :  { %v617_v18 = vpop.eup %616 }
 0x21d   :  { %v299_v19 = vmul.f32 %v617_v18, %v484_v17 }
 0x21f   :  { %v304_v20 = vrot.slane %v299_v19, %v699_v43 }
 0x221   :  { %v306_v22 = vmul.f32 %v304_v20, %v286_v8 }
 0x223   :  { %v315_v23 = vadd.f32 %v486_v21, %v306_v22 }
 0x225   :  { %v316_v24 = vmax.f32 %v315_v23, 0.0 }
 0x227   :  { %v334_v25 = vpack.c.bf16 %v316_v24, %v316_v24 }
 0x229   :  { %582 = vmatmul.mubr.bf16.vlgmr.msra.gmra.mxu0 %v334_v25 }
 0x2e9   :  { %v417_v26 = vpop.f32.mrf.mxu0 }
 0x2ea   :  { %v423_v27 = vrot.slane %v417_v26, 4 }
 0x2eb   :  { %v583_v28 = vpop.f32.mrf.mxu0 }
 0x2ec   :  { %v424_v29 = vadd.f32 %v423_v27, %v417_v26 }
 0x2ed   :  { %v420_v30 = vpop.f32.mrf.mxu0 }
 0x2ee   :  { %v425_v31 = vrot.slane %v424_v29, 2 }
 0x2ef   :  { %v584_v32 = vpop.f32.mrf.mxu0 }
 0x2f0   :  { %v426_v33 = vadd.f32 %v425_v31, %v424_v29 }
 0x2f2   :  { %v427_v34 = vrot.slane %v426_v33, 1 }
 0x2f4   :  { %v428_v35 = vadd.f32 %v427_v34, %v426_v33 }
 0x2f6   :  { %v429_v36 = vmul.f32 0.125, %v428_v35 }
 0x2f8   :  { %v430_v37 = vsub.f32 %v417_v26, %v429_v36 }
 0x2fa   :  { %v431_v38 = vmul.f32 %v430_v37, %v430_v37 }
 0x2fc   :  { %v432_v39 = vrot.slane %v431_v38, 4 }
 0x2fe   :  { %v433_v40 = vadd.f32 %v432_v39, %v431_v38 }
 0x300   :  { %v434_v41 = vrot.slane %v433_v40, 2 }
 0x302   :  { %v435_v42 = vadd.f32 %v434_v41, %v433_v40 }
 0x304   :  { %v436_v44 = vrot.slane %v435_v42, 1 }
 0x306   :  { %v437_v45 = vadd.f32 %v436_v44, %v435_v42 }
 0x308   :  { %v438_v46 = vmul.f32 0.125, %v437_v45 }
 0x30a   :  { %v441_v47 = vadd.f32 1e-05, %v438_v46 }
 0x30c   :  { %618 = vrsqrt.f32 %v441_v47 }
 0x319   :  { %v619_v49 = vpop.eup %618 }
 0x31a   :  { %v443_v50 = vmul.f32 %v619_v49, %v495_v48 }
 0x31c   :  { %v448_v51 = vrot.slane %v443_v50, %v699_v43 }
 0x31e   :  { %v450_v53 = vmul.f32 %v448_v51, %v430_v37 }
 0x320   :  { %v459_v54 = vadd.f32 %v497_v52, %v450_v53 }
 0x322   :  { %460 = vst [vmem:[%s732_s3] sm:$0xff] %v459_v54 }
 0x323   :  { %465 = vsyncpa [#allocation3], 1 }

</bundles_post_ra>
